<compile_context>
chip_gen: v7x
topology: tpu7x:2x2x1
jax: 0.10.0
libtpu: 0.0.40
codegen_flags: <defaults>
</compile_context>

<pallas_src>
import jax
import jax.numpy as jnp
from jax.experimental import pallas as pl
from jax.experimental.pallas import tpu as pltpu

_EPS = 1e-10


# ---------------------------------------------------------------------------
# Kernel: entire DistanceNetwork forward in one invocation
# ---------------------------------------------------------------------------
def _distance_kernel(support_ref, target_ref, o_ref):
    """support_ref: (S, B, D); target_ref: (B, D); o_ref: (B, S)."""
    support = support_ref[...].astype(jnp.float32)          # (S, B, D)
    target = target_ref[...].astype(jnp.float32)            # (B, D)

    # Single fused pass over `support`: both reductions are over the lane
    # axis D, so the VPU multiplies feed two XLU lane-reductions.
    #   ssum[s, b] = sum_d support[s, b, d]^2
    #   dots[s, b] = sum_d support[s, b, d] * target[b, d]
    ssum = jnp.sum(support * support, axis=-1)               # (S, B) f32
    dots = jnp.sum(support * target[None, :, :], axis=-1)    # (S, B) f32

    # clamp(eps, inf).rsqrt() -> EUP rsqrt (free slot relative to the VPU).
    inv_mag = jax.lax.rsqrt(jnp.maximum(ssum, _EPS))         # (S, B)

    # Torch returns similarities.t(): (S, B) -> (B, S); tiny in-register
    # transpose (fits a single vreg at these shapes).
    o_ref[...] = jnp.transpose(dots * inv_mag).astype(o_ref.dtype)


# ---------------------------------------------------------------------------
# Wrapper
# ---------------------------------------------------------------------------
def distance_network(support_set, input_image):
    """support_set: (S, B, D); input_image: (B, D)  ->  (B, S) float32."""
    S, B, D = support_set.shape
    assert input_image.shape == (B, D), (support_set.shape, input_image.shape)
    return pl.pallas_call(
        _distance_kernel,
        out_shape=jax.ShapeDtypeStruct((B, S), jnp.float32),
        in_specs=[
            # Full arrays resident in VMEM; no grid, no tiling needed.
            pl.BlockSpec(memory_space=pltpu.MemorySpace.VMEM),
            pl.BlockSpec(memory_space=pltpu.MemorySpace.VMEM),
        ],
        out_specs=pl.BlockSpec(memory_space=pltpu.MemorySpace.VMEM),
    )(support_set.astype(jnp.float32), input_image.astype(jnp.float32))


# ---------------------------------------------------------------------------
# Pure-JAX reference (mirrors the PyTorch forward) for the correctness check
# ---------------------------------------------------------------------------
def reference_forward(support_set, input_image):
    support_set = support_set.astype(jnp.float32)
    input_image = input_image.astype(jnp.float32)
    ssum = jnp.sum(support_set ** 2, axis=-1)                    # (S, B)
    inv_mag = 1.0 / jnp.sqrt(jnp.clip(ssum, _EPS, None))         # clamp(eps, inf).rsqrt()
    dots = jnp.einsum('sbd,bd->sb', support_set, input_image)    # bmm per (s, b)
    return (dots * inv_mag).T                                    # (B, S)


# ---------------------------------------------------------------------------
if __name__ == "__main__":
    # sequence_length=8, batch_size=2, embedding dim=64 (per the docstring).
    S, B, D = 8, 2, 64

    key = jax.random.PRNGKey(0)
    k_s, k_i = jax.random.split(key)
    support_set = jax.random.normal(k_s, (S, B, D), jnp.float32)
    input_image = jax.random.normal(k_i, (B, D), jnp.float32)

    out = jax.block_until_ready(distance_network(support_set, input_image))
    ref = jax.block_until_ready(reference_forward(support_set, input_image))

    assert out.shape == (B, S), out.shape
    assert jnp.allclose(out, ref, rtol=1e-5, atol=1e-5), (
        float(jnp.max(jnp.abs(out - ref))))

    print("KERNEL_OK")
</pallas_src>

<mosaic_0001>
module attributes {stable_mosaic.version = 11 : i64} {
  func.func @_distance_kernel(%arg0: memref<8x2x64xf32, #tpu.memory_space<vmem>>, %arg1: memref<2x64xf32, #tpu.memory_space<vmem>>, %arg2: memref<2x8xf32, #tpu.memory_space<vmem>>) attributes {dimension_semantics = [], scalar_prefetch = 0 : i64, scratch_operands = 0 : i64, tpu.core_type = #tpu.core_type<tc>} {
    %c0 = arith.constant 0 : index
    %c0_0 = arith.constant 0 : index
    %c0_1 = arith.constant 0 : index
    %0 = vector.load %arg0[%c0, %c0_0, %c0_1] : memref<8x2x64xf32, #tpu.memory_space<vmem>>, vector<8x2x64xf32>
    %c0_2 = arith.constant 0 : index
    %c0_3 = arith.constant 0 : index
    %1 = vector.load %arg1[%c0_2, %c0_3] : memref<2x64xf32, #tpu.memory_space<vmem>>, vector<2x64xf32>
    %2 = arith.mulf %0, %0 : vector<8x2x64xf32>
    %cst = arith.constant dense<0.000000e+00> : vector<8x2xf32>
    %3 = vector.multi_reduction <add>, %2, %cst [2] : vector<8x2x64xf32> to vector<8x2xf32>
    %4 = vector.shape_cast %1 : vector<2x64xf32> to vector<1x2x64xf32>
    %5 = vector.broadcast %4 : vector<1x2x64xf32> to vector<8x2x64xf32>
    %6 = arith.mulf %0, %5 : vector<8x2x64xf32>
    %cst_4 = arith.constant dense<0.000000e+00> : vector<8x2xf32>
    %7 = vector.multi_reduction <add>, %6, %cst_4 [2] : vector<8x2x64xf32> to vector<8x2xf32>
    %cst_5 = arith.constant 1.000000e-10 : f32
    %8 = vector.broadcast %cst_5 : f32 to vector<8x2xf32>
    %9 = arith.maximumf %3, %8 : vector<8x2xf32>
    %10 = math.rsqrt %9 : vector<8x2xf32>
    %11 = arith.mulf %7, %10 : vector<8x2xf32>
    %12 = tpu.transpose %11, [1, 0] : vector<8x2xf32> -> vector<2x8xf32>
    %c0_6 = arith.constant 0 : index
    %c0_7 = arith.constant 0 : index
    %13 = vector.load %arg2[%c0_6, %c0_7] : memref<2x8xf32, #tpu.memory_space<vmem>>, vector<2x8xf32>
    tpu.vector_store %arg2[%c0_6, %c0_7], %12 {strides = array<i32>} : memref<2x8xf32, #tpu.memory_space<vmem>>, vector<2x8xf32>,
    return
  }
}

</mosaic_0001>

<bundles_post_ra>
// kernel: tpu_custom_call.1
= control target key start
LH: loop header
LB: loop body
LE: loop exit
PB: predicated region body
PF: predicated region fallthrough
CT: control target
= control target key end

     0   :  { %7 = vsyncpa [#allocation3], 0  ;;  %s361_s0 = inlined_call_operand.hbm [shape: f32[8,2,64], index: 0, kind: input, shape index: {}]   ;;  %s362_s1 = inlined_call_operand.vmem [shape: f32[2,64], index: 1, kind: input, shape index: {}]   ;;  %s363_s2 = inlined_call_operand.hbm [shape: f32[2,8], index: 2, kind: output, shape index: {}]  }
   0x1   :  { %8 = vsyncpa [#allocation4], 0  ;;  %s299_s9 = smov [#allocation2]   ;;  %s251_s13 = scalar_lea.hbm %s361_s0, 256 }
   0x2   :  { %s14_s10 = sshll.u32 %s299_s9, 4  ;;  %p252_p0 = scmp.ne.s32.totalorder %s361_s0, %s251_s13  ;;  %s15_s10 = int_to_ptr.vmem [resolvable:$true] %s14_s10 }
   0x3   :  { %p255_p1 = scmp.lt.u32.totalorder %s251_s13, %s361_s0 }
   0x5   :  { %p257_p2 = pnand %p255_p1, %p252_p0 }
   0x7   :  { %260 = shalt.err (!%p257_p2)
}
   0x8   :  { %s261_s18 = scalar_lea.vmem %s15_s10, 256  ;;  %p266_p4 = scmp.lt.s32.totalorder %s15_s10, %s15_s10 }
   0x9   :  { %p262_p3 = scmp.ne.s32.totalorder %s15_s10, %s261_s18  ;;  %p267_p5 = scmp.lt.s32.totalorder %s261_s18, %s261_s18 }
   0xb   :  { %p268_p6 = por %p267_p5, %p266_p4 }
   0xd   :  { %p269_p7 = pnand %p268_p6, %p262_p3 }
   0xf   :  { %272 = shalt.err (!%p269_p7)
}
  0x10   :  { %s300_s19 = smov 32   ;;  %s301_s20 = smov 2  }
  0x11   :  { %20 = dma.hbm_to_vmem [thread:$0]  %s361_s0, 256, %s15_s10, [#allocation3], %s300_s19, %s300_s19, %s301_s20  }
  0x12   :  { %295 = dma.done.wait [#allocation3], 256  }
  0x13   :  { %296 = vsyncadd [#allocation3], 4294967040  ;;  %vm43_vm0 = vcmask 517120   ;;  %v28_v0 = vld [vmem:[#allocation2 + $0x4] sm:$0x3]  ;;  %v132_v51 = vlaneseq  ;;  %vm166_vm1 = vcmask 1041409  }
  0x14   :  { %v26_v1 = vld [vmem:[#allocation2] sm:$0x3]  ;;  %v29_v2 = vld [vmem:[#allocation2 + $0x6] sm:$0x3]  ;;  %v37_v3 = vmul.f32 %v28_v0, %v28_v0  ;;  %v27_v6 = vld [vmem:[#allocation2 + $0x2] sm:$0x3] }
  0x15   :  { %v35_v4 = vmul.f32 %v26_v1, %v26_v1  ;;  %v38_v5 = vmul.f32 %v29_v2, %v29_v2  ;;  %v36_v7 = vmul.f32 %v27_v6, %v27_v6  ;;  %v31_v8 = vld [vmem:[#allocation2 + $0xa] sm:$0x3]  ;;  %v30_v9 = vld [vmem:[#allocation2 + $0x8] sm:$0x3]  ;;  %v33_v16 = vld [vmem:[#allocation2 + $0xe] sm:$0x3] }
  0x16   :  { %v50_v10 = vsel %vm43_vm0, %v37_v3, 0.0  ;;  %v40_v14 = vmul.f32 %v31_v8, %v31_v8  ;;  %v39_v15 = vmul.f32 %v30_v9, %v30_v9  ;;  %v32_v17 = vld [vmem:[#allocation2 + $0xc] sm:$0x3]  ;;  %v42_v20 = vmul.f32 %v33_v16, %v33_v16  ;;  %v34_v22 = vld [vmem:[%s362_s1] sm:$0x3]  ;;  %s302_s1 = smov [#allocation5]  }
  0x17   :  { %v44_v11 = vsel %vm43_vm0, %v35_v4, 0.0  ;;  %51 = vadd.xlane.f32.xlu1 %v50_v10  ;;  %v53_v12 = vsel %vm43_vm0, %v38_v5, 0.0  ;;  %v47_v13 = vsel %vm43_vm0, %v36_v7, 0.0  ;;  %v41_v21 = vmul.f32 %v32_v17, %v32_v17  ;;  %s221_s24 = sshll.u32 %s302_s1, 4  ;;  %s222_s24 = int_to_ptr.vmem [resolvable:$true] %s221_s24 }
  0x18   :  { %45 = vadd.xlane.f32.xlu0 %v44_v11  ;;  %v59_v18 = vsel %vm43_vm0, %v40_v14, 0.0  ;;  %v56_v19 = vsel %vm43_vm0, %v39_v15, 0.0  ;;  %v65_v23 = vsel %vm43_vm0, %v42_v20, 0.0  ;;  %v69_v25 = vmul.f32 %v34_v22, %v27_v6  ;;  %s273_s25 = scalar_lea.vmem %s222_s24, 32  ;;  %p278_p9 = scmp.lt.s32.totalorder %s222_s24, %s222_s24 }
  0x19   :  { %v62_v24 = vsel %vm43_vm0, %v41_v21, 0.0  ;;  %v68_v26 = vmul.f32 %v34_v22, %v26_v1  ;;  %v71_v29 = vmul.f32 %v34_v22, %v29_v2  ;;  %v70_v30 = vmul.f32 %v34_v22, %v28_v0  ;;  %p274_p8 = scmp.ne.s32.totalorder %s222_s24, %s273_s25  ;;  %p279_p10 = scmp.lt.s32.totalorder %s273_s25, %s273_s25 }
  0x1a   :  { %v79_v27 = vsel %vm43_vm0, %v69_v25, 0.0  ;;  %v73_v33 = vmul.f32 %v34_v22, %v31_v8  ;;  %v72_v34 = vmul.f32 %v34_v22, %v30_v9  ;;  %v75_v37 = vmul.f32 %v34_v22, %v33_v16 }
  0x1b   :  { %54 = vadd.xlane.f32.xlu1 %v53_v12  ;;  %v76_v28 = vsel %vm43_vm0, %v68_v26, 0.0  ;;  %v85_v31 = vsel %vm43_vm0, %v71_v29, 0.0  ;;  %v82_v32 = vsel %vm43_vm0, %v70_v30, 0.0  ;;  %v74_v38 = vmul.f32 %v34_v22, %v32_v17  ;;  %p280_p11 = por %p279_p10, %p278_p9 }
  0x1c   :  { %48 = vadd.xlane.f32.xlu0 %v47_v13  ;;  %v91_v35 = vsel %vm43_vm0, %v73_v33, 0.0  ;;  %v88_v36 = vsel %vm43_vm0, %v72_v34, 0.0  ;;  %v97_v39 = vsel %vm43_vm0, %v75_v37, 0.0  ;;  %v133_v56 = vand.u32 127, %v132_v51 }
  0x1d   :  { %v94_v40 = vsel %vm43_vm0, %v74_v38, 0.0  ;;  %v135_v57 = vshrl.u32 %v132_v51, 7  ;;  %vm168_vm2 = vcmask 1042434   ;;  %vm170_vm3 = vcmask 1043459   ;;  %p281_p12 = pnand %p280_p11, %p274_p8 }
  0x1e   :  { %vm172_vm4 = vcmask 1044484   ;;  %vm174_vm5 = vcmask 1045509   ;;  %vm176_vm6 = vcmask 1046534   ;;  %vm178_vm7 = vcmask 1047559  }
  0x1f   :  { %60 = vadd.xlane.f32.xlu1 %v59_v18  ;;  %v136_v61 = vsub.s32 %v133_v56, %v135_v57  ;;  %vm213_vm8 = vcmask 58368  }
  0x20   :  { %57 = vadd.xlane.f32.xlu0 %v56_v19 }
  0x23   :  { %66 = vadd.xlane.f32.xlu1 %v65_v23 }
  0x24   :  { %63 = vadd.xlane.f32.xlu0 %v62_v24 }
  0x27   :  { %80 = vadd.xlane.f32.xlu1 %v79_v27 }
  0x28   :  { %77 = vadd.xlane.f32.xlu0 %v76_v28 }
  0x2b   :  { %86 = vadd.xlane.f32.xlu1 %v85_v31 }
  0x2c   :  { %83 = vadd.xlane.f32.xlu0 %v82_v32 }
  0x2f   :  { %92 = vadd.xlane.f32.xlu1 %v91_v35 }
  0x30   :  { %89 = vadd.xlane.f32.xlu0 %v88_v36 }
  0x33   :  { %98 = vadd.xlane.f32.xlu1 %v97_v39 }
  0x34   :  { %95 = vadd.xlane.f32.xlu0 %v94_v40 }
  0xa4   :  { %v52_v41 = vpop.xlane.xlu1 %51 }
  0xa5   :  { %v46_v42 = vpop.xlane.xlu0 %45  ;;  %v102_v46 = vmax.f32 %v52_v41, 1e-10 }
  0xa6   :  { %v100_v43 = vmax.f32 %v46_v42, 1e-10 }
  0xa8   :  { %v55_v44 = vpop.xlane.xlu1 %54  ;;  %235 = vrsqrt.f32 %v100_v43 }
  0xa9   :  { %v49_v45 = vpop.xlane.xlu0 %48  ;;  %v103_v48 = vmax.f32 %v55_v44, 1e-10 }
  0xaa   :  { %v101_v47 = vmax.f32 %v49_v45, 1e-10 }
  0xac   :  { %237 = vrsqrt.f32 %v101_v47  ;;  %v61_v49 = vpop.xlane.xlu1 %60 }
  0xad   :  { %v58_v50 = vpop.xlane.xlu0 %57  ;;  %239 = vrsqrt.f32 %v102_v46  ;;  %v105_v52 = vmax.f32 %v61_v49, 1e-10 }
  0xae   :  { %241 = vrsqrt.f32 %v103_v48  ;;  %v104_v53 = vmax.f32 %v58_v50, 1e-10 }
  0xaf   :  { %243 = vrsqrt.f32 %v105_v52 }
  0xb0   :  { %v67_v54 = vpop.xlane.xlu1 %66  ;;  %245 = vrsqrt.f32 %v104_v53 }
  0xb1   :  { %v64_v55 = vpop.xlane.xlu0 %63  ;;  %v107_v58 = vmax.f32 %v67_v54, 1e-10 }
  0xb2   :  { %v106_v59 = vmax.f32 %v64_v55, 1e-10  ;;  %v236_v60 = vpop.eup %235 }
  0xb3   :  { %247 = vrsqrt.f32 %v107_v58 }
  0xb4   :  { %v81_v62 = vpop.xlane.xlu1 %80  ;;  %249 = vrsqrt.f32 %v106_v59 }
  0xb5   :  { %v78_v63 = vpop.xlane.xlu0 %77 }
  0xb6   :  { %v116_v0 = vmul.f32 %v236_v60, %v78_v63  ;;  %v238_v1 = vpop.eup %237 }
  0xb7   :  { %v240_v2 = vpop.eup %239  ;;  %v117_v3 = vmul.f32 %v238_v1, %v81_v62 }
  0xb8   :  { %v242_v4 = vpop.eup %241  ;;  %v137_v5 = vrot.slane %v116_v0, %v136_v61  ;;  %v87_v6 = vpop.xlane.xlu1 %86 }
  0xb9   :  { %v84_v7 = vpop.xlane.xlu0 %83  ;;  %v141_v8 = vrot.slane %v117_v3, %v136_v61  ;;  %v119_v9 = vmul.f32 %v242_v4, %v87_v6  ;;  %v244_v11 = vpop.eup %243 }
  0xba   :  { %v118_v10 = vmul.f32 %v240_v2, %v84_v7  ;;  %v246_v13 = vpop.eup %245 }
  0xbb   :  { %v167_v14 = vsel %vm166_vm1, %v141_v8, %v137_v5  ;;  %v149_v15 = vrot.slane %v119_v9, %v136_v61 }
  0xbc   :  { %v145_v12 = vrot.slane %v118_v10, %v136_v61  ;;  %v93_v16 = vpop.xlane.xlu1 %92 }
  0xbd   :  { %v90_v17 = vpop.xlane.xlu0 %89  ;;  %v121_v19 = vmul.f32 %v244_v11, %v93_v16  ;;  %v248_v21 = vpop.eup %247 }
  0xbe   :  { %v169_v18 = vsel %vm168_vm2, %v145_v12, %v167_v14  ;;  %v120_v20 = vmul.f32 %v246_v13, %v90_v17  ;;  %v250_v23 = vpop.eup %249 }
  0xbf   :  { %v157_v24 = vrot.slane %v121_v19, %v136_v61  ;;  %v171_v25 = vsel %vm170_vm3, %v149_v15, %v169_v18 }
  0xc0   :  { %v153_v22 = vrot.slane %v120_v20, %v136_v61  ;;  %v99_v26 = vpop.xlane.xlu1 %98 }
  0xc1   :  { %v96_v27 = vpop.xlane.xlu0 %95  ;;  %v123_v29 = vmul.f32 %v248_v21, %v99_v26 }
  0xc2   :  { %v173_v28 = vsel %vm172_vm4, %v153_v22, %v171_v25  ;;  %v122_v30 = vmul.f32 %v250_v23, %v96_v27 }
  0xc3   :  { %v165_v31 = vrot.slane %v123_v29, %v136_v61  ;;  %v175_v33 = vsel %vm174_vm5, %v157_v24, %v173_v28 }
  0xc4   :  { %v161_v32 = vrot.slane %v122_v30, %v136_v61 }
  0xc6   :  { %v177_v34 = vsel %vm176_vm6, %v161_v32, %v175_v33 }
  0xc7   :  { %v179_v35 = vsel %vm178_vm7, %v165_v31, %v177_v34 }
  0xc8   :  { %181 = vxpose.xlu0.b32.start.end [1/1] (short) (narrow) %v179_v35, 8 }
 0x148   :  { %v197_v36 = vpop.trf.xlu0 }
 0x149   :  { %214 = vst.msk [vmem:[#allocation5] sm:$0x3] %vm213_vm8, %v197_v36 }
 0x14a   :  { %284 = shalt.err (!%p281_p12)
}
 0x14b   :  { %s285_s28 = scalar_lea.hbm %s363_s2, 32 }
 0x14c   :  { %p286_p13 = scmp.ne.s32.totalorder %s363_s2, %s285_s28  ;;  %p289_p0 = scmp.lt.u32.totalorder %s285_s28, %s363_s2 }
 0x14e   :  { %p291_p1 = pnand %p289_p0, %p286_p13 }
 0x150   :  { %294 = shalt.err (!%p291_p1)
}
 0x151   :  { %224 = dma.vmem_to_hbm [thread:$0]  %s222_s24, 32, %s363_s2, [#allocation4]  }
 0x152   :  { %297 = dma.done.wait [#allocation4], 32  }
 0x153   :  { %298 = vsyncadd [#allocation4], 4294967264 }
 0x154   :  { %228 = vsyncpa [#allocation3], 1 }
 0x155   :  { %229 = vsyncpa [#allocation4], 1 }

</bundles_post_ra>
